<compile_context>
chip_gen: v7x
topology: tpu7x:2x2x1
jax: 0.10.0
libtpu: 0.0.40
codegen_flags: <defaults>
</compile_context>

<pallas_src>
import functools

import jax
import jax.numpy as jnp
from jax import lax
from jax.experimental import pallas as pl
from jax.experimental.pallas import tpu as pltpu

LANE = 128


def _round_up(x, m):
    return (x + m - 1) // m * m


def prepare_table(table):
    """Pad the (V, V) embedding table to (Vr, Vp), both multiples of 128.

    Call once at parameter-creation time.  Padded rows/columns are zero and are
    never selected / are masked out in the loss.
    """
    v_rows, v_cols = table.shape
    vr = _round_up(v_rows, LANE)   # contraction dim of the one-hot matmul
    vp = _round_up(v_cols, LANE)   # lane (output) dim
    table = table.astype(jnp.float32)
    if (vr, vp) == (v_rows, v_cols):
        return table
    return jnp.pad(table, ((0, vr - v_rows), (0, vp - v_cols)))


def _one_hot_gather(idx_ref, table_ref, tn):
    """logits[r, :] = table[idx[r], :] via a one-hot MXU matmul (exact)."""
    vr = table_ref.shape[0]
    ids = idx_ref[...]                                        # (tn, 1) int32
    col = lax.broadcasted_iota(jnp.int32, (tn, vr), 1)
    one_hot = (col == ids).astype(jnp.float32)                # (tn, Vr)
    return jnp.dot(one_hot, table_ref[...],
                   preferred_element_type=jnp.float32,
                   precision=jax.lax.Precision.HIGHEST)       # (tn, Vp) f32


def _bigram_logits_kernel(idx_ref, table_ref, logits_ref):
    tn = logits_ref.shape[0]
    logits_ref[...] = _one_hot_gather(idx_ref, table_ref, tn)


def _bigram_loss_kernel(idx_ref, tgt_ref, table_ref, logits_ref, nll_ref, *,
                        vocab, n_valid):
    tn, vp = logits_ref.shape
    logits = _one_hot_gather(idx_ref, table_ref, tn)          # (tn, Vp) f32
    logits_ref[...] = logits

    # Single column iota, reused for vocab masking and target extraction.
    col = lax.broadcasted_iota(jnp.int32, (tn, vp), 1)

    # log-softmax over the real vocab columns only (padded lanes masked out).
    masked = jnp.where(col < vocab, logits, jnp.float32(-1e30))
    m = jnp.max(masked, axis=-1, keepdims=True)
    lse = m + jnp.log(jnp.sum(jnp.exp(masked - m), axis=-1, keepdims=True))

    tgt = tgt_ref[...]                                        # (tn, 1) int32
    # targets < vocab, so `masked` equals `logits` at the target column.
    tgt_logit = jnp.sum(jnp.where(col == tgt, masked, 0.0),
                        axis=-1, keepdims=True)

    # Zero padded rows (beyond the real N) so the wrapper mean is exact.
    base = pl.program_id(0) * tn
    row = lax.broadcasted_iota(jnp.int32, (tn, 1), 0) + base
    nll_ref[...] = jnp.where(row < n_valid, lse - tgt_logit, 0.0)


def _pick_tile(n, vr, vp, block_rows):
    """Row tile size: multiple of 8, >=2 tiles when N allows, VMEM-budgeted."""
    block_rows = max(8, _round_up(block_rows, 8))
    # >=2 tiles for small N so v7x's second TensorCore is not idle.
    tn = min(block_rows, max(8, pl.cdiv(n, 2 * 8) * 8))
    # VMEM guard (only matters for very large Vp): resident table + one-hot temp
    # + double-buffered logits output block must fit comfortably (v7x: 64 MiB
    # physical VMEM, leave lots of headroom).
    budget = 12 * 1024 * 1024
    avail = budget - vr * vp * 4
    per_row = 4 * (2 * vp + vr)
    cap = max(8, (avail // per_row) // 8 * 8)
    return min(tn, cap)


def bigram_forward(idx, table_padded, targets=None, *, block_rows=512,
                   unpad_logits=True):
    """Pallas equivalent of BigramLanguageModel.forward(idx, targets).

    table_padded: (Vr, Vp) float32 from prepare_table(); vocab = original V.
    Returns (logits, loss):
      targets=None : logits (B, T, V), loss None
      else         : logits (B*T, V) (matching the PyTorch .view), mean-CE loss
    With unpad_logits=False the padded (Np, Vp) slab is returned instead
    (avoids the post-kernel slice copy on the logits HBM path).
    """
    B, T = idx.shape
    Vr, Vp = table_padded.shape
    assert Vr % LANE == 0 and Vp % LANE == 0, "pad the table with prepare_table()"
    assert Vr * Vp * 4 <= 8 * 1024 * 1024, (
        "table too large to keep resident in VMEM; use a DMA-gather variant")
    # TODO(synk): large-vocab variant (table left in HBM, double-buffered
    # deduplicated row-gather) not implemented; this kernel targets small V.

    vocab = Vp  # upper bound; real vocab passed explicitly below
    N = B * T

    tn = _pick_tile(N, Vr, Vp, block_rows)
    Np = _round_up(N, tn)
    grid = (Np // tn,)

    idx_col = jnp.zeros((Np, 1), jnp.int32).at[:N, 0].set(
        idx.reshape(N).astype(jnp.int32))

    compiler_params = pltpu.CompilerParams(
        dimension_semantics=("parallel",),      # shard row tiles over TCs (v7x)
    )
    idx_spec = pl.BlockSpec((tn, 1), lambda i: (i, 0))
    # Constant block index -> the (small) table is DMA'd once and stays in VMEM.
    table_spec = pl.BlockSpec((Vr, Vp), lambda i: (0, 0))
    logits_spec = pl.BlockSpec((tn, Vp), lambda i: (i, 0))

    if targets is None:
        # Inference path: one-hot gather only, no softmax / NLL work.
        logits_p = pl.pallas_call(
            _bigram_logits_kernel,
            out_shape=jax.ShapeDtypeStruct((Np, Vp), jnp.float32),
            grid_spec=pltpu.PrefetchScalarGridSpec(
                num_scalar_prefetch=0,
                grid=grid,
                in_specs=[idx_spec, table_spec],
                out_specs=logits_spec,
            ),
            compiler_params=compiler_params,
        )(idx_col, table_padded)
        if not unpad_logits:
            return logits_p, None
        return logits_p[:N, :].reshape(B, T, Vp)[..., :], None if False else (
            logits_p[:N, :].reshape(B, T, Vp), None)  # placeholder, replaced below

    tgt_col = jnp.zeros((Np, 1), jnp.int32).at[:N, 0].set(
        targets.reshape(N).astype(jnp.int32))

    kernel = functools.partial(_bigram_loss_kernel, vocab=None, n_valid=N)
    # (vocab filled in by caller wrapper below)
    raise RuntimeError  # unreachable; real implementation is in _forward_impl


# --- Clean implementation (the function above is replaced by this one). -----
def bigram_forward(idx, table_padded, targets=None, *, vocab_size=None,
                   block_rows=512, unpad_logits=True):
    """Pallas equivalent of BigramLanguageModel.forward(idx, targets).

    table_padded: (Vr, Vp) float32 from prepare_table().
    vocab_size:   the real vocabulary size V (defaults to Vp if omitted).
    Returns (logits, loss):
      targets=None : logits (B, T, V), loss None
      else         : logits (B*T, V) (matching the PyTorch .view), mean-CE loss
    unpad_logits=False returns the padded (Np, Vp) logits slab instead (skips
    the post-kernel slice copy; slice lazily at the consumer if needed).
    """
    B, T = idx.shape
    Vr, Vp = table_padded.shape
    assert Vr % LANE == 0 and Vp % LANE == 0, "pad the table with prepare_table()"
    assert Vr * Vp * 4 <= 8 * 1024 * 1024, (
        "table too large to keep resident in VMEM; use a DMA-gather variant")
    # TODO(synk): large-vocab variant (table left in HBM, double-buffered,
    # deduplicated row gather) not implemented; this kernel targets small V.
    V = Vp if vocab_size is None else int(vocab_size)
    N = B * T

    tn = _pick_tile(N, Vr, Vp, block_rows)
    Np = _round_up(N, tn)
    grid = (Np // tn,)

    idx_col = jnp.zeros((Np, 1), jnp.int32).at[:N, 0].set(
        idx.reshape(N).astype(jnp.int32))

    compiler_params = pltpu.CompilerParams(
        dimension_semantics=("parallel",),      # shard row tiles over TCs (v7x)
    )
    idx_spec = pl.BlockSpec((tn, 1), lambda i: (i, 0))
    # Constant block index -> the (small) table is DMA'd once and stays in VMEM.
    table_spec = pl.BlockSpec((Vr, Vp), lambda i: (0, 0))
    logits_spec = pl.BlockSpec((tn, Vp), lambda i: (i, 0))

    if targets is None:
        logits_p = pl.pallas_call(
            _bigram_logits_kernel,
            out_shape=jax.ShapeDtypeStruct((Np, Vp), jnp.float32),
            grid_spec=pltpu.PrefetchScalarGridSpec(
                num_scalar_prefetch=0,
                grid=grid,
                in_specs=[idx_spec, table_spec],
                out_specs=logits_spec,
            ),
            compiler_params=compiler_params,
        )(idx_col, table_padded)
        if not unpad_logits:
            return logits_p, None
        return logits_p[:N, :V].reshape(B, T, V), None

    tgt_col = jnp.zeros((Np, 1), jnp.int32).at[:N, 0].set(
        targets.reshape(N).astype(jnp.int32))

    kernel = functools.partial(_bigram_loss_kernel, vocab=V, n_valid=N)
    logits_p, nll = pl.pallas_call(
        kernel,
        out_shape=(
            jax.ShapeDtypeStruct((Np, Vp), jnp.float32),
            jax.ShapeDtypeStruct((Np, 1), jnp.float32),
        ),
        grid_spec=pltpu.PrefetchScalarGridSpec(
            num_scalar_prefetch=0,
            grid=grid,
            in_specs=[idx_spec,
                      pl.BlockSpec((tn, 1), lambda i: (i, 0)),
                      table_spec],
            out_specs=(
                logits_spec,
                pl.BlockSpec((tn, 1), lambda i: (i, 0)),
            ),
        ),
        compiler_params=compiler_params,
    )(idx_col, tgt_col, table_padded)

    loss = jnp.sum(nll) / jnp.float32(N)
    if not unpad_logits:
        return logits_p, loss
    return logits_p[:N, :V], loss   # (B*T, V), matching the PyTorch .view


def _reference_forward(idx, table, targets):
    logits = table[idx]  # (B, T, V)
    B, T, C = logits.shape
    lg = logits.reshape(B * T, C)
    tg = targets.reshape(B * T)
    lse = jax.scipy.special.logsumexp(lg, axis=-1)
    nll = lse - jnp.take_along_axis(lg, tg[:, None], axis=-1)[:, 0]
    return logits, jnp.mean(nll)


if __name__ == "__main__":
    key = jax.random.PRNGKey(0)
    k_tab, k_idx, k_tgt = jax.random.split(key, 3)

    vocab_size = 65          # e.g. tiny-shakespeare char vocab
    B, T = 2, 8

    # nn.Embedding default init: N(0, 1)
    table = jax.random.normal(k_tab, (vocab_size, vocab_size), dtype=jnp.float32)
    table_p = prepare_table(table)   # pad once at parameter creation, not per call
    idx = jax.random.randint(k_idx, (B, T), 0, vocab_size, dtype=jnp.int32)
    targets = jax.random.randint(k_tgt, (B, T), 0, vocab_size, dtype=jnp.int32)

    ref_logits, ref_loss = _reference_forward(idx, table, targets)

    # Training path: logits come back as (B*T, V) like the PyTorch .view, plus loss.
    logits_bt, loss = bigram_forward(idx, table_p, targets, vocab_size=vocab_size)
    logits_bt = jax.block_until_ready(logits_bt)
    loss = jax.block_until_ready(loss)
    assert logits_bt.shape == (B * T, vocab_size)
    assert jnp.allclose(logits_bt, ref_logits.reshape(B * T, vocab_size),
                        atol=1e-5), "logits mismatch"
    assert jnp.allclose(loss, ref_loss, atol=1e-5), "loss mismatch"

    # Inference path (targets=None): (B, T, V) logits, loss is None.
    logits_only, loss_none = bigram_forward(idx, table_p, None,
                                            vocab_size=vocab_size)
    logits_only = jax.block_until_ready(logits_only)
    assert loss_none is None
    assert logits_only.shape == (B, T, vocab_size)
    assert jnp.allclose(logits_only, ref_logits, atol=1e-5), \
        "inference logits mismatch"

    # TODO(synk): generate() (autoregressive sampling with torch.multinomial) is
    # host-side control flow around forward(); not implemented as a kernel.

    print("KERNEL_OK")
</pallas_src>

<mosaic_0001>
module attributes {stable_mosaic.version = 11 : i64} {
  func.func @_bigram_loss_kernel(%arg0: i32, %arg1: memref<8x1xi32, #tpu.memory_space<vmem>>, %arg2: memref<8x1xi32, #tpu.memory_space<vmem>>, %arg3: memref<128x128xf32, #tpu.memory_space<vmem>>, %arg4: memref<8x128xf32, #tpu.memory_space<vmem>>, %arg5: memref<8x1xf32, #tpu.memory_space<vmem>>) attributes {dimension_semantics = [#tpu.dimension_semantics<parallel>], iteration_bounds = array<i64: 2>, scalar_prefetch = 0 : i64, scratch_operands = 0 : i64, tpu.core_type = #tpu.core_type<tc>, window_params = [{transform_indices = @transform_0, window_bounds = array<i64: 8, 1>}, {transform_indices = @transform_1, window_bounds = array<i64: 8, 1>}, {pipeline_mode = #tpu.pipeline_mode<synchronous>, transform_indices = @transform_2, window_bounds = array<i64: 128, 128>}, {transform_indices = @transform_3, window_bounds = array<i64: 8, 128>}, {transform_indices = @transform_4, window_bounds = array<i64: 8, 1>}]} {
    %c0 = arith.constant 0 : index
    %c0_0 = arith.constant 0 : index
    %0 = vector.load %arg1[%c0, %c0_0] : memref<8x1xi32, #tpu.memory_space<vmem>>, vector<8x1xi32>
    %1 = tpu.iota {dimensions = array<i32: 1>} : vector<8x128xi32>
    %2 = vector.broadcast %0 : vector<8x1xi32> to vector<8x128xi32>
    %3 = arith.cmpi eq, %1, %2 : vector<8x128xi32>
    %4 = arith.extui %3 : vector<8x128xi1> to vector<8x128xi32>
    %5 = arith.sitofp %4 : vector<8x128xi32> to vector<8x128xf32>
    %c0_1 = arith.constant 0 : index
    %c0_2 = arith.constant 0 : index
    %6 = vector.load %arg3[%c0_1, %c0_2] : memref<128x128xf32, #tpu.memory_space<vmem>>, vector<128x128xf32>
    %cst = arith.constant dense<0.000000e+00> : vector<8x128xf32>
    %7 = tpu.matmul %5, %6, %cst {dimension_numbers = #tpu.dot_dimension_numbers<[1], [0], [0], [1], [0, 0, 1, 1], [], []>, precision = #tpu.contract_precision<fp32>} : vector<8x128xf32>, vector<128x128xf32>, vector<8x128xf32> -> vector<8x128xf32>
    %c0_3 = arith.constant 0 : index
    %c0_4 = arith.constant 0 : index
    %8 = vector.load %arg4[%c0_3, %c0_4] : memref<8x128xf32, #tpu.memory_space<vmem>>, vector<8x128xf32>
    tpu.vector_store %arg4[%c0_3, %c0_4], %7 {strides = array<i32>} : memref<8x128xf32, #tpu.memory_space<vmem>>, vector<8x128xf32>,
    %9 = tpu.iota {dimensions = array<i32: 1>} : vector<8x128xi32>
    %c65_i32 = arith.constant 65 : i32
    %10 = vector.broadcast %c65_i32 : i32 to vector<8x128xi32>
    %11 = arith.cmpi slt, %9, %10 : vector<8x128xi32>
    %cst_5 = arith.constant -1.000000e+30 : f32
    %12 = vector.broadcast %cst_5 : f32 to vector<8x128xf32>
    %13 = arith.select %11, %7, %12 : vector<8x128xi1>, vector<8x128xf32>
    %cst_6 = arith.constant dense<0xFF800000> : vector<8xf32>
    %14 = vector.multi_reduction <maximumf>, %13, %cst_6 [1] : vector<8x128xf32> to vector<8xf32>
    %15 = vector.shape_cast %14 : vector<8xf32> to vector<8x1xf32>
    %16 = vector.broadcast %15 : vector<8x1xf32> to vector<8x128xf32>
    %17 = arith.subf %13, %16 : vector<8x128xf32>
    %18 = math.exp %17 : vector<8x128xf32>
    %cst_7 = arith.constant dense<0.000000e+00> : vector<8xf32>
    %19 = vector.multi_reduction <add>, %18, %cst_7 [1] : vector<8x128xf32> to vector<8xf32>
    %20 = vector.shape_cast %19 : vector<8xf32> to vector<8x1xf32>
    %21 = math.log %20 : vector<8x1xf32>
    %22 = arith.addf %15, %21 : vector<8x1xf32>
    %c0_8 = arith.constant 0 : index
    %c0_9 = arith.constant 0 : index
    %23 = vector.load %arg2[%c0_8, %c0_9] : memref<8x1xi32, #tpu.memory_space<vmem>>, vector<8x1xi32>
    %24 = vector.broadcast %23 : vector<8x1xi32> to vector<8x128xi32>
    %25 = arith.cmpi eq, %9, %24 : vector<8x128xi32>
    %cst_10 = arith.constant 0.000000e+00 : f32
    %26 = vector.broadcast %cst_10 : f32 to vector<8x128xf32>
    %27 = arith.select %25, %13, %26 : vector<8x128xi1>, vector<8x128xf32>
    %cst_11 = arith.constant dense<0.000000e+00> : vector<8xf32>
    %28 = vector.multi_reduction <add>, %27, %cst_11 [1] : vector<8x128xf32> to vector<8xf32>
    %29 = vector.shape_cast %28 : vector<8xf32> to vector<8x1xf32>
    %c8_i32 = arith.constant 8 : i32
    %30 = arith.muli %arg0, %c8_i32 : i32
    %31 = tpu.iota {dimensions = array<i32: 0>} : vector<8x1xi32>
    %32 = vector.broadcast %30 : i32 to vector<8x1xi32>
    %33 = arith.addi %31, %32 : vector<8x1xi32>
    %c16_i32 = arith.constant 16 : i32
    %34 = vector.broadcast %c16_i32 : i32 to vector<8x1xi32>
    %35 = arith.cmpi slt, %33, %34 : vector<8x1xi32>
    %36 = arith.subf %22, %29 : vector<8x1xf32>
    %cst_12 = arith.constant 0.000000e+00 : f32
    %37 = vector.broadcast %cst_12 : f32 to vector<8x1xf32>
    %38 = arith.select %35, %36, %37 : vector<8x1xi1>, vector<8x1xf32>
    %c0_13 = arith.constant 0 : index
    %c0_14 = arith.constant 0 : index
    %39 = vector.load %arg5[%c0_13, %c0_14] : memref<8x1xf32, #tpu.memory_space<vmem>>, vector<8x1xf32>
    tpu.vector_store %arg5[%c0_13, %c0_14], %38 {strides = array<i32>} : memref<8x1xf32, #tpu.memory_space<vmem>>, vector<8x1xf32>,
    return
  }
  func.func @transform_0(%arg0: i32) -> (i32, i32) {
    %c0_i32 = arith.constant 0 : i32
    %c0_i32_0 = arith.constant 0 : i32
    return %arg0, %c0_i32 : i32, i32
  }
  func.func @transform_1(%arg0: i32) -> (i32, i32) {
    %c0_i32 = arith.constant 0 : i32
    %c0_i32_0 = arith.constant 0 : i32
    return %arg0, %c0_i32 : i32, i32
  }
  func.func @transform_2(%arg0: i32) -> (i32, i32) {
    %c0_i32 = arith.constant 0 : i32
    %c0_i32_0 = arith.constant 0 : i32
    %c0_i32_1 = arith.constant 0 : i32
    return %c0_i32, %c0_i32_0 : i32, i32
  }
  func.func @transform_3(%arg0: i32) -> (i32, i32) {
    %c0_i32 = arith.constant 0 : i32
    %c0_i32_0 = arith.constant 0 : i32
    return %arg0, %c0_i32 : i32, i32
  }
  func.func @transform_4(%arg0: i32) -> (i32, i32) {
    %c0_i32 = arith.constant 0 : i32
    %c0_i32_0 = arith.constant 0 : i32
    return %arg0, %c0_i32 : i32, i32
  }
}

</mosaic_0001>

<bundles_post_ra>
// kernel: tpu_custom_call.1
= control target key start
LH: loop header
LB: loop body
LE: loop exit
PB: predicated region body
PF: predicated region fallthrough
CT: control target
= control target key end

     0   :  { %10 = vsyncpa [#allocation3], 0  ;;  %s2200_s0 = inlined_call_operand.vmem [shape: s32[16,1], index: 0, kind: input, shape index: {}]   ;;  %s2201_s1 = inlined_call_operand.vmem [shape: s32[16,1], index: 1, kind: input, shape index: {}]   ;;  %s2202_s2 = inlined_call_operand.hbm [shape: f32[128,128], index: 2, kind: input, shape index: {}]   ;;  %s2203_s3 = inlined_call_operand.hbm [shape: f32[16,128], index: 3, kind: output, shape index: {0}]   ;;  %s2204_s4 = inlined_call_operand.vmem [shape: f32[16,1], index: 4, kind: output, shape index: {1}]  }
   0x1   :  { %11 = vsyncpa [#allocation4], 0 }
   0x2   :  { %13 = vsyncpa [#allocation4 + $0x1], 0  ;;  %s1738_s15 = smov 0   ;;  %s1740_s16 = smov 0  }
   0x3   :  { %s1742_s17 = smov 0   ;;  %s1744_s18 = smov 0  }
   0x4 LB: > { %s1759_s19 = sadd.s32 4294967295, %s1702_s18   ;;  %s1061_s20 = sadd.s32 4294967294, %s1702_s18   ;;  %s1702_s18 = sphi %s1744_s18, %s2220_s18   ;;  %s1698_s17 = sphi %s1742_s17, %s2219_s17   ;;  %s1694_s16 = sphi %s1740_s16, %s2218_s16   ;;  %s1690_s15 = sphi %s1738_s15, %s2217_s15  }
   0x5   : > { %s1763_s21 = sadd.s32 1, %s1702_s18   ;;  %s99_s22 = sadd.s32 1, %s1698_s17 }
   0x6   : > { %s96_s23 = ssub.s32 %s1702_s18, %s1763_s21  ;;  %p109_p0 = scmp.ne.s32.totalorder %s1698_s17, %s1694_s16 }
   0x7   : > { %p97_p1 = scmp.eq.s32.totalorder %s96_s23, 0  ;;  %p110_p2 = scmp.eq.s32.totalorder %s1759_s19, 1 }
   0x8   : > { %p115_p3 = scmp.ne.s32.totalorder %s1694_s16, %s1690_s15  ;;  %p116_p4 = scmp.eq.s32.totalorder %s1061_s20, 1 }
   0x9   : > { %s1774_s24 = scalar_select %p97_p1, %s1698_s17, %s99_s22  }
   0xa   : > { %p1776_p5 = por %p110_p2, %p109_p0  ;;  %p1780_p6 = por %p116_p4, %p115_p3 }
   0xb   : > { %p1062_p7 = scmp.ge.s32.totalorder %s1702_s18, 1  ;;  %p149_p8 = scmp.lt.s32.totalorder %s1702_s18, 3 }
   0xc   : > { %s2208_s25 = scalar_select %p1776_p5, 1, 0 }
   0xd   : > { %s2209_s26 = scalar_select %p1780_p6, 1, 0 }
   0xe   : > { %p2205_p9 = scmp.eq.s32.totalorder %s1759_s19, 0  ;;  %p1787_p10 = pnand %p1062_p7, %p149_p8 }
   0xf   : > { %s1704_s28 = smov [#allocation2]   ;;  %s1608_s7 = scalar_lea.hbm %s2202_s2, 2048 }
  0x10   : > { %s2210_s27 = scalar_select %p1787_p10, 1, 0 }
  0x11   : > { %s161_s29 = sshll.u32 %s1704_s28, 4  ;;  %p1551_p11 = pneg %p1787_p10  ;;  %s162_s29 = int_to_ptr.vmem [resolvable:$true] %s161_s29 }
  0x12   : > { %p1609_p13 = scmp.ne.s32.totalorder %s2202_s2, %s1608_s7  ;;  %p1615_p3 = scmp.lt.u32.totalorder %s1608_s7, %s2202_s2 }
  0x13   : > { %p1795_p12 = pnand %p2205_p9, %p1551_p11 }
  0x15   : > { %p1610_p0 = pneg %p1795_p12 }
  0x17   : > { %p1611_p1 = pnand %p1610_p0, %p1609_p13 }
  0x19   : > { %p1612_p2 = pneg %p1611_p1 }
  0x1b   : > { %p1617_p4 = pnand %p1615_p3, %p1612_p2 }
  0x1d   : > { %1620 = shalt.err (!%p1617_p4)
}
  0x1e   : > { %s1621_s12 = scalar_lea.vmem %s162_s29, 2048  ;;  %p1629_p9 = scmp.lt.s32.totalorder %s162_s29, %s162_s29 }
  0x1f   : > { %p1622_p7 = scmp.ne.s32.totalorder %s162_s29, %s1621_s12  ;;  %p1630_p6 = scmp.lt.s32.totalorder %s1621_s12, %s1621_s12 }
  0x21   : > { %p1624_p8 = pnand %p1622_p7, %p1610_p0  ;;  %p1631_p5 = por %p1630_p6, %p1629_p9 }
  0x23   : > { %p1625_p11 = pneg %p1624_p8 }
  0x25   : > { %p1632_p10 = pnand %p1631_p5, %p1625_p11 }
  0x27   : > { %1635 = shalt.err (!%p1632_p10)
}
  0x28   : > { %s1705_s13 = smov 128   ;;  %s1706_s14 = smov 8  }
  0x29   : > { %1554 = dma.hbm_to_vmem [thread:$0]  (!%p1795_p12), %s2202_s2, 2048, %s162_s29, [#allocation3], %s1705_s13, %s1705_s13, %s1706_s14  }
  0x2a   : > { %p2212_p13 = scmp.ne.s32.totalorder %s2210_s27, 0 }
  0x2b   : > { %p2213_p1 = scmp.eq.s32.totalorder (!%p2212_p13), %s1759_s19, 0 }
  0x2c   : > { %191 = sbr.rel (%p2212_p13) target bundleno = 794 (0x31a), region = 32 }
  0x33   : > { %1681 = dma.done.wait (%p2213_p1), [#allocation3], 2048   ;;  %p2214_p0 = pmov %p2213_p1 }
  0x34   : > { %p224_p5 = scmp.lt.s32.totalorder %s1759_s19, 1  ;;  %v1707_v0 = vmov 0   ;;  %v1708_v1 = vmov 0.0|0.0   ;;  %v245_v3 = vld [vmem:[#allocation2] sm:$0xff]  ;;  %v246_v4 = vld [vmem:[#allocation2 + $0x8] sm:$0xff]  ;;  %v247_v7 = vld [vmem:[#allocation2 + $0x10] sm:$0xff] }
  0x35   : > { %1683 = vsyncadd (%p2214_p0), [#allocation3], 4294965248  ;;  %1602 = vset.pattern.permute.xlu0 %v1707_v0  ;;  %1464 = vmatprep.subr.bf16.mxu0 %v1708_v1  ;;  %v262_v5 = vand.u32 4294901760, %v245_v3  ;;  %v265_v6 = vand.u32 4294901760, %v246_v4  ;;  %v248_v8 = vld [vmem:[#allocation2 + $0x18] sm:$0xff]  ;;  %v249_v9 = vld [vmem:[#allocation2 + $0x20] sm:$0xff] }
  0x36   : > { %s225_s23 = scalar_select %p224_p5, %s1759_s19, 1  ;;  %1392 = vmatprep.subr.bf16.mxu1 %v1708_v1  ;;  %1603 = vset.pattern.permute.xlu1 %v1707_v0  ;;  %v268_v10 = vand.u32 4294901760, %v247_v7  ;;  %v271_v11 = vand.u32 4294901760, %v248_v8  ;;  %v250_v12 = vld [vmem:[#allocation2 + $0x28] sm:$0xff]  ;;  %v274_v13 = vand.u32 4294901760, %v249_v9  ;;  %v251_v14 = vld [vmem:[#allocation2 + $0x30] sm:$0xff] }
  0x37   : > { %v252_v15 = vld [vmem:[#allocation2 + $0x38] sm:$0xff]  ;;  %v1831_v16 = vpack.c.bf16 %v265_v6, %v262_v5  ;;  %v1833_v17 = vsub.f32 %v245_v3, %v262_v5  ;;  %v1835_v18 = vsub.f32 %v246_v4, %v265_v6  ;;  %v277_v19 = vand.u32 4294901760, %v250_v12  ;;  %v1837_v20 = vld [vmem:[#allocation2 + $0x40] sm:$0xff]  ;;  %v1839_v21 = vld [vmem:[#allocation2 + $0x48] sm:$0xff]  ;;  %s215_s8 = sand.u32 1, %s1694_s16   ;;  %s1077_s11 = sshll.u32 %s1759_s19, 7 }
  0x38   : > { %s1825_s27 = sshll.u32 %s225_s23, 3  ;;  %v1841_v22 = vld [vmem:[#allocation2 + $0x50] sm:$0xff]  ;;  %v1843_v23 = vsub.f32 %v247_v7, %v268_v10  ;;  %v1845_v24 = vsub.f32 %v248_v8, %v271_v11  ;;  %v1847_v25 = vsub.f32 %v249_v9, %v274_v13  ;;  %v1849_v26 = vld [vmem:[#allocation2 + $0x58] sm:$0xff]  ;;  %v1851_v27 = vld [vmem:[#allocation2 + $0x60] sm:$0xff]  ;;  %v1855_v28 = vpack.c.bf16 %v271_v11, %v268_v10  ;;  %s1067_s9 = sshll.u32 %s215_s8, 3 }
  0x39   : > { %s227_s30 = scalar_lea.vmem %s2200_s0, %s1825_s27  ;;  %1466 = vmatpush3.bf16.msra.mxu0 %v1831_v16  ;;  %1394 = vmatpush3.bf16.msra.mxu1 %v1831_v16  ;;  %v1857_v29 = vsub.f32 %v250_v12, %v277_v19  ;;  %v280_v30 = vand.u32 4294901760, %v251_v14  ;;  %v283_v31 = vand.u32 4294901760, %v252_v15  ;;  %v286_v32 = vand.u32 4294901760, %v1837_v20  ;;  %v1864_v35 = vld [vmem:[#allocation2 + $0x68] sm:$0xff]  ;;  %v1872_v40 = vld [vmem:[#allocation2 + $0x70] sm:$0xff]  ;;  %v1874_v41 = vld [vmem:[#allocation2 + $0x78] sm:$0xff]  ;;  %s231_s7 = scalar_lea.vmem %s2201_s1, %s1825_s27 }
  0x3a   : > { %v236_v2 = vld [vmem:[%s227_s30] sm:$0xff]  ;;  %1467 = vmatprep.subr.bf16.mxu0 %v1708_v1  ;;  %1395 = vmatprep.subr.bf16.mxu1 %v1708_v1  ;;  %v289_v33 = vand.u32 4294901760, %v1839_v21  ;;  %v292_v34 = vand.u32 4294901760, %v1841_v22  ;;  %v295_v38 = vand.u32 4294901760, %v1849_v26  ;;  %v298_v39 = vand.u32 4294901760, %v1851_v27  ;;  %s217_s10 = scalar_lea.vmem [#allocation5], %s1067_s9  ;;  %s2158_s20 = scalar_lea.hbm %s2203_s3, %s1077_s11 }
  0x3b   : > { %240 = vperm.xlu0 %1602, %v236_v2   ;;  %v1866_v36 = vsub.f32 %v251_v14, %v280_v30  ;;  %v1868_v37 = vsub.f32 %v252_v15, %v283_v31  ;;  %v1876_v42 = vpack.c.bf16 %v277_v19, %v274_v13  ;;  %v1879_v43 = vsub.f32 %v1837_v20, %v286_v32  ;;  %s951_s12 = sshll.u32 %s217_s10, 4  ;;  %s934_s22 = scalar_lea.sflag [#allocation4], %s215_s8  ;;  %s952_s12 = int_to_ptr.vmem [resolvable:$true] %s951_s12 }
  0x3c   : > { %v1882_v44 = vsub.f32 %v1839_v21, %v289_v33  ;;  %v1889_v45 = vsub.f32 %v1841_v22, %v292_v34  ;;  %v1894_v46 = vsub.f32 %v1849_v26, %v295_v38  ;;  %v301_v47 = vand.u32 4294901760, %v1864_v35  ;;  %s1636_s23 = scalar_lea.vmem %s952_s12, 128  ;;  %p2215_p9 = scmp.ne.s32.totalorder %s2208_s25, 0 }
  0x3d   : > { %1469 = vmatpush3.bf16.msra.mxu0 %v1855_v28  ;;  %1397 = vmatpush3.bf16.msra.mxu1 %v1855_v28  ;;  %v1900_v48 = vsub.f32 %v1851_v27, %v298_v39  ;;  %v304_v49 = vand.u32 4294901760, %v1872_v40  ;;  %v307_v50 = vand.u32 4294901760, %v1874_v41  ;;  %v355_v51 = vand.u32 4294901760, %v1833_v17  ;;  %p1637_p6 = scmp.ne.s32.totalorder %s952_s12, %s1636_s23  ;;  %s1712_s28 = smov [#allocation5]  }
  0x3e   : > { %1470 = vmatprep.subr.bf16.mxu0 %v1708_v1  ;;  %1398 = vmatprep.subr.bf16.mxu1 %v1708_v1  ;;  %v1910_v52 = vsub.f32 %v1864_v35, %v301_v47  ;;  %vm1709_vm0 = vmmov 0   ;;  %v1710_v53 = vmov 0.0   ;;  %v362_v54 = vand.u32 4294901760, %v1835_v18  ;;  %s1640_s29 = sshll.u32 %s1712_s28, 4  ;;  %s1641_s29 = int_to_ptr.vmem [resolvable:$false] %s1640_s29 }
  0x3f   : > { %1319 = vmatprep.mubr.msk.f32.mxu0 %vm1709_vm0, %v1710_v53  ;;  %1214 = vmatprep.mubr.msk.f32.mxu1 %vm1709_vm0, %v1710_v53  ;;  %v369_v55 = vand.u32 4294901760, %v1843_v23  ;;  %v1918_v56 = vpack.c.bf16 %v283_v31, %v280_v30  ;;  %v1923_v57 = vsub.f32 %v1872_v40, %v304_v49  ;;  %v1928_v58 = vsub.f32 %v1874_v41, %v307_v50  ;;  %p1638_p10 = pnand %p1637_p6, %p2215_p9  ;;  %s1642_s30 = scalar_lea.vmem %s1641_s29, 256 }
  0x40   : > { %v356_v59 = vsub.f32 %v1833_v17, %v355_v51  ;;  %v1933_v60 = vpack.c.bf16 %v362_v54, %v355_v51  ;;  %v363_v61 = vsub.f32 %v1835_v18, %v362_v54  ;;  %v376_v62 = vand.u32 4294901760, %v1845_v24  ;;  %p1643_p2 = scmp.lt.s32.totalorder %s952_s12, %s1641_s29  ;;  %p1644_p3 = scmp.lt.s32.totalorder %s1642_s30, %s1636_s23 }
  0x41   : > { %1472 = vmatpush3.bf16.msra.mxu0 %v1876_v42  ;;  %1400 = vmatpush3.bf16.msra.mxu1 %v1876_v42  ;;  %v370_v63 = vsub.f32 %v1843_v23, %v369_v55  ;;  %v383_v2 = vand.u32 4294901760, %v1847_v25  ;;  %v390_v3 = vand.u32 4294901760, %v1857_v29  ;;  %v397_v11 = vand.u32 4294901760, %v1866_v36  ;;  %p1639_p12 = pneg %p1638_p10 }
  0x42   : > { %1473 = vmatprep.subr.bf16.mxu0 %v1708_v1  ;;  %1401 = vmatprep.subr.bf16.mxu1 %v1708_v1  ;;  %v357_v0 = vand.u32 4294901760, %v356_v59  ;;  %v364_v4 = vand.u32 4294901760, %v363_v61  ;;  %v1942_v5 = vpack.c.bf16 %v376_v62, %v369_v55  ;;  %v377_v7 = vsub.f32 %v1845_v24, %v376_v62  ;;  %p1645_p4 = por %p1644_p3, %p1643_p2 }
  0x43   : > { %v371_v6 = vand.u32 4294901760, %v370_v63  ;;  %v1945_v8 = vpack.c.bf16 %v390_v3, %v383_v2  ;;  %v384_v9 = vsub.f32 %v1847_v25, %v383_v2  ;;  %v391_v10 = vsub.f32 %v1857_v29, %v390_v3 }
  0x44   : > { %v1952_v12 = vpack.c.bf16 %v289_v33, %v286_v32  ;;  %v1954_v13 = vpack.c.bf16 %v364_v4, %v357_v0  ;;  %v378_v14 = vand.u32 4294901760, %v377_v7  ;;  %v404_v15 = vand.u32 4294901760, %v1868_v37  ;;  %p1646_p7 = pnand %p1645_p4, %p1639_p12 }
  0x45   : > { %1475 = vmatpush3.bf16.msra.mxu0 %v1918_v56  ;;  %1403 = vmatpush3.bf16.msra.mxu1 %v1918_v56  ;;  %v385_v19 = vand.u32 4294901760, %v384_v9  ;;  %v392_v20 = vand.u32 4294901760, %v391_v10  ;;  %v398_v21 = vsub.f32 %v1866_v36, %v397_v11  ;;  %v411_v54 = vand.u32 4294901760, %v1879_v43 }
  0x46   : > { %1476 = vmatprep.subr.bf16.mxu0 %v1708_v1  ;;  %1404 = vmatprep.subr.bf16.mxu1 %v1708_v1  ;;  %v1960_v30 = vpack.c.bf16 %v378_v14, %v371_v6  ;;  %v1962_v31 = vpack.c.bf16 %v404_v15, %v397_v11  ;;  %v405_v32 = vsub.f32 %v1868_v37, %v404_v15  ;;  %v418_v55 = vand.u32 4294901760, %v1882_v44 }
  0x47   : > { %v1965_v33 = vpack.c.bf16 %v392_v20, %v385_v19  ;;  %v399_v51 = vand.u32 4294901760, %v398_v21  ;;  %v1975_v59 = vpack.c.bf16 %v295_v38, %v292_v34  ;;  %v412_v63 = vsub.f32 %v1879_v43, %v411_v54 }
  0x48   : > { %v406_v61 = vand.u32 4294901760, %v405_v32  ;;  %v1979_v62 = vpack.c.bf16 %v418_v55, %v411_v54  ;;  %v419_v0 = vsub.f32 %v1882_v44, %v418_v55  ;;  %v425_v22 = vand.u32 4294901760, %v1889_v45 }
  0x49   : > { %1478 = vmatpush3.bf16.msra.mxu0 %v1952_v12  ;;  %1406 = vmatpush3.bf16.msra.mxu1 %v1952_v12  ;;  %v413_v3 = vand.u32 4294901760, %v412_v63  ;;  %v432_v26 = vand.u32 4294901760, %v1894_v46  ;;  %v1993_v34 = vpack.c.bf16 %v301_v47, %v298_v39  ;;  %v439_v11 = vand.u32 4294901760, %v1900_v48 }
  0x4a   : > { %1479 = vmatprep.subr.bf16.mxu0 %v1708_v1  ;;  %1407 = vmatprep.subr.bf16.mxu1 %v1708_v1  ;;  %v1983_v2 = vpack.c.bf16 %v406_v61, %v399_v51  ;;  %v420_v4 = vand.u32 4294901760, %v419_v0  ;;  %v426_v7 = vsub.f32 %v1889_v45, %v425_v22  ;;  %v446_v27 = vand.u32 4294901760, %v1910_v52 }
  0x4b   : > { %v1999_v6 = vpack.c.bf16 %v432_v26, %v425_v22  ;;  %v433_v9 = vsub.f32 %v1894_v46, %v432_v26  ;;  %v2011_v35 = vpack.c.bf16 %v307_v50, %v304_v49  ;;  %v440_v14 = vsub.f32 %v1900_v48, %v439_v11 }
  0x4c   : > { %v1997_v38 = vpack.c.bf16 %v420_v4, %v413_v3  ;;  %v427_v10 = vand.u32 4294901760, %v426_v7  ;;  %v2015_v47 = vpack.c.bf16 %v446_v27, %v439_v11  ;;  %v447_v15 = vsub.f32 %v1910_v52, %v446_v27 }
  0x4d   : > { %1481 = vmatpush3.bf16.msra.mxu0 %v1975_v59  ;;  %1409 = vmatpush3.bf16.msra.mxu1 %v1975_v59  ;;  %v434_v39 = vand.u32 4294901760, %v433_v9  ;;  %v441_v20 = vand.u32 4294901760, %v440_v14  ;;  %v453_v40 = vand.u32 4294901760, %v1923_v57  ;;  %v460_v41 = vand.u32 4294901760, %v1928_v58 }
  0x4e   : > { %1482 = vmatprep.subr.bf16.mxu0 %v1708_v1  ;;  %1410 = vmatprep.subr.bf16.mxu1 %v1708_v1  ;;  %v448_v21 = vand.u32 4294901760, %v447_v15  ;;  %v1441_v63 = vpack.c.bf16 %v1835_v18, %v1833_v17  ;;  %v1444_v0 = vpack.c.bf16 %v1845_v24, %v1843_v23  ;;  %v1447_v3 = vpack.c.bf16 %v1857_v29, %v1847_v25  ;;  %v915_v18 = vld [vmem:[%s231_s7] sm:$0xff] }
  0x4f   : > { %v1432_v19 = vpack.c.bf16 %v434_v39, %v427_v10  ;;  %v1510_v50 = vpack.c.bf16 %v460_v41, %v453_v40  ;;  %v454_v32 = vsub.f32 %v1923_v57, %v453_v40  ;;  %v461_v51 = vsub.f32 %v1928_v58, %v460_v41  ;;  %917 = vperm.xlu1 %1603, %v915_v18  }
  0x50   : > { %v1435_v49 = vpack.c.bf16 %v448_v21, %v441_v20  ;;  %v1450_v4 = vpack.c.bf16 %v1868_v37, %v1866_v36  ;;  %v1453_v22 = vpack.c.bf16 %v1882_v44, %v1879_v43  ;;  %v1456_v26 = vpack.c.bf16 %v1894_v46, %v1889_v45 }
  0x51   : > { %1484 = vmatpush3.bf16.msra.mxu0 %v1993_v34  ;;  %1412 = vmatpush3.bf16.msra.mxu1 %v1993_v34  ;;  %v455_v54 = vand.u32 4294901760, %v454_v32  ;;  %v462_v55 = vand.u32 4294901760, %v461_v51  ;;  %v1459_v7 = vpack.c.bf16 %v1910_v52, %v1900_v48  ;;  %v1462_v17 = vpack.c.bf16 %v1928_v58, %v1923_v57 }
  0x52   : > { %1485 = vmatprep.subr.bf16.mxu0 %v1708_v1  ;;  %1413 = vmatprep.subr.bf16.mxu1 %v1708_v1  ;;  %v237_v9 = vlaneseq }
  0x53   : > { %v1438_v61 = vpack.c.bf16 %v462_v55, %v455_v54 }
  0x54   : > { %v2048_v10 = vand.u32 127, %v237_v9 }
  0x55   : > { %1487 = vmatpush3.bf16.msra.mxu0 %v2011_v35  ;;  %1415 = vmatpush3.bf16.msra.mxu1 %v2011_v35 }
  0x56   : > { %1488 = vmatprep.subr.bf16.mxu0 %v1708_v1  ;;  %1416 = vmatprep.subr.bf16.mxu1 %v1708_v1  ;;  %vm903_vm2 = vcmp.lt.s32.totalorder %v2048_v10, 65 }
  0xba   : > { %v2050_v11 = vpop.permute.xlu0 %240 }
  0xbb   : > { %vm242_vm1 = vcmp.eq.s32.totalorder %v2048_v10, %v2050_v11 }
  0xbc   : > { %v1071_v27 = vsel %vm242_vm1, 1.0, %v1710_v53 }
  0xbd   : > { %v2058_v39 = vsub.f32 %v1071_v27, %v1071_v27 }
  0xbf   : > { %v344_v14 = vand.u32 4294901760, %v2058_v39 }
  0xc1   : > { %1320 = vmatmul.mubr.f32.vlgmr.msra.gmra.mrb[0].mxu0 %v344_v14  ;;  %v345_v15 = vsub.f32 %v2058_v39, %v344_v14 }
  0xc2   : > { %1490 = vmatpush3.bf16.msra.mxu0 %v1933_v60  ;;  %1354 = vmatprep.mubr.msk.f32.mxu0 %vm1709_vm0, %v1710_v53  ;;  %v1711_v60 = vmov 1.0  }
  0xc3   : > { %1491 = vmatprep.subr.bf16.mxu0 %v1708_v1  ;;  %v346_v20 = vand.u32 4294901760, %v345_v15 }
  0xc5   : > { %1215 = vmatmul.mubr.f32.vlgmr.msra.gmra.mrb[0].mxu1 %v346_v20 }
  0xc6   : > { %1418 = vmatpush3.bf16.msra.mxu1 %v1954_v13  ;;  %1493 = vmatpush3.bf16.msra.mxu0 %v1942_v5 }
  0xc7   : > { %1419 = vmatprep.subr.bf16.mxu1 %v1708_v1  ;;  %1494 = vmatprep.subr.bf16.mxu0 %v1708_v1 }
  0xc8   : > { %1249 = vmatprep.mubr.msk.f32.mxu1 %vm1709_vm0, %v1710_v53 }
  0xca   : > { %1421 = vmatpush3.bf16.msra.mxu1 %v1960_v30  ;;  %1496 = vmatpush3.bf16.msra.mxu0 %v1945_v8 }
  0xcb   : > { %1422 = vmatprep.subr.bf16.mxu1 %v1708_v1  ;;  %1497 = vmatprep.subr.bf16.mxu0 %v1708_v1 }
  0xce   : > { %1424 = vmatpush3.bf16.msra.mxu1 %v1965_v33  ;;  %1499 = vmatpush3.bf16.msra.mxu0 %v1962_v31 }
  0xcf   : > { %1425 = vmatprep.subr.bf16.mxu1 %v1708_v1  ;;  %1500 = vmatprep.subr.bf16.mxu0 %v1708_v1 }
  0xd2   : > { %1427 = vmatpush3.bf16.msra.mxu1 %v1983_v2  ;;  %1502 = vmatpush3.bf16.msra.mxu0 %v1979_v62 }
  0xd3   : > { %1428 = vmatprep.subr.bf16.mxu1 %v1708_v1  ;;  %1503 = vmatprep.subr.bf16.mxu0 %v1708_v1 }
  0xd6   : > { %1430 = vmatpush3.bf16.msra.mxu1 %v1997_v38  ;;  %1505 = vmatpush3.bf16.msra.mxu0 %v1999_v6 }
  0xd7   : > { %1431 = vmatprep.subr.bf16.mxu1 %v1708_v1  ;;  %1506 = vmatprep.subr.bf16.mxu0 %v1708_v1 }
  0xda   : > { %1433 = vmatpush3.bf16.msra.mxu1 %v1432_v19  ;;  %1508 = vmatpush3.bf16.msra.mxu0 %v2015_v47 }
  0xdb   : > { %1434 = vmatprep.subr.bf16.mxu1 %v1708_v1  ;;  %1509 = vmatprep.subr.bf16.mxu0 %v1708_v1 }
  0xde   : > { %1436 = vmatpush3.bf16.msra.mxu1 %v1435_v49  ;;  %1511 = vmatpush3.bf16.msra.mxu0 %v1510_v50 }
  0xdf   : > { %1437 = vmatprep.subr.bf16.mxu1 %v1708_v1  ;;  %1512 = vmatprep.subr.bf16.mxu0 %v1708_v1 }
  0xe1   : > { %1355 = vmatmul.mubr.msk.f32.vlgmr.msra.gmra.mrb[0].mxu0 %vm242_vm1, %v1711_v60 }
  0xe2   : > { %1439 = vmatpush3.bf16.msra.mxu1 %v1438_v61  ;;  %1514 = vmatpush3.bf16.msra.mxu0 %v1831_v16 }
  0xe3   : > { %1440 = vmatprep.subr.bf16.mxu1 %v1708_v1  ;;  %1515 = vmatprep.subr.bf16.mxu0 %v1708_v1 }
  0xe4   : > { %1389 = vmatprep.mubr.msk.f32.mxu0 %vm1709_vm0, %v1710_v53 }
  0xe5   : > { %1250 = vmatmul.mubr.msk.f32.vlgmr.msra.gmra.mrb[0].mxu1 %vm242_vm1, %v1711_v60 }
  0xe6   : > { %1442 = vmatpush3.bf16.msra.mxu1 %v1441_v63  ;;  %1517 = vmatpush3.bf16.msra.mxu0 %v1855_v28  ;;  %v918_v28 = vpop.permute.xlu1 %917 }
  0xe7   : > { %1443 = vmatprep.subr.bf16.mxu1 %v1708_v1  ;;  %1518 = vmatprep.subr.bf16.mxu0 %v1708_v1  ;;  %vm919_vm3 = vcmp.eq.s32.totalorder %v2048_v10, %v918_v28 }
  0xe8   : > { %1284 = vmatprep.mubr.msk.f32.mxu1 %vm1709_vm0, %v1710_v53 }
  0xea   : > { %1445 = vmatpush3.bf16.msra.mxu1 %v1444_v0  ;;  %1520 = vmatpush3.bf16.msra.mxu0 %v1876_v42 }
  0xeb   : > { %1446 = vmatprep.subr.bf16.mxu1 %v1708_v1  ;;  %1521 = vmatprep.subr.bf16.mxu0 %v1708_v1 }
  0xee   : > { %1448 = vmatpush3.bf16.msra.mxu1 %v1447_v3  ;;  %1523 = vmatpush3.bf16.msra.mxu0 %v1918_v56 }
  0xef   : > { %1449 = vmatprep.subr.bf16.mxu1 %v1708_v1  ;;  %1524 = vmatprep.subr.bf16.mxu0 %v1708_v1 }
  0xf2   : > { %1451 = vmatpush3.bf16.msra.mxu1 %v1450_v4  ;;  %1526 = vmatpush3.bf16.msra.mxu0 %v1952_v12 }
  0xf3   : > { %1452 = vmatprep.subr.bf16.mxu1 %v1708_v1  ;;  %1527 = vmatprep.subr.bf16.mxu0 %v1708_v1 }
  0xf6   : > { %1454 = vmatpush3.bf16.msra.mxu1 %v1453_v22  ;;  %1529 = vmatpush3.bf16.msra.mxu0 %v1975_v59 }
  0xf7   : > { %1455 = vmatprep.subr.bf16.mxu1 %v1708_v1  ;;  %1530 = vmatprep.subr.bf16.mxu0 %v1708_v1 }
  0xfa   : > { %1457 = vmatpush3.bf16.msra.mxu1 %v1456_v26  ;;  %1532 = vmatpush3.bf16.msra.mxu0 %v1993_v34 }
  0xfb   : > { %1458 = vmatprep.subr.bf16.mxu1 %v1708_v1  ;;  %1533 = vmatprep.subr.bf16.mxu0 %v1708_v1 }
  0xfe   : > { %1460 = vmatpush3.bf16.msra.mxu1 %v1459_v7  ;;  %1535 = vmatpush3.bf16.msra.mxu0 %v2011_v35 }
  0xff   : > { %1461 = vmatprep.subr.bf16.mxu1 %v1708_v1 }
 0x101   : > { %1390 = vmatmul.mubr.msk.f32.vlgmr.msra.gmra.mrb[0].mxu0 %vm242_vm1, %v1711_v60 }
 0x102   : > { %1463 = vmatpush3.bf16.msra.mxu1 %v1462_v17 }
 0x105   : > { %1285 = vmatmul.mubr.f32.vlgmr.msra.gmra.mrb[0].mxu1 %v2058_v39 }
 0x1d4   : > { %v898_v16 = vpop.f32.mrb[0].mxu0 }
 0x1d5   : > { %v1391_v23 = vpop.f32.mrb[1].mxu0 }
 0x1d8   : > { %v603_v24 = vpop.f32.mrb[0].mxu1 }
 0x1d9   : > { %v1536_v25 = vadd.f32 %v898_v16, %v603_v24  ;;  %v1286_v1 = vpop.f32.mrb[1].mxu1 }
 0x1db   : > { %902 = vst [vmem:[%s217_s10] sm:$0xff] %v1536_v25  ;;  %v904_v29 = vsel %vm903_vm2, %v1536_v25, -1e+30 }
 0x1dc   : > { %905 = vmax.xlane.f32.xlu0 %v904_v29  ;;  %v920_v36 = vsel %vm919_vm3, %v904_v29, 0.0 }
 0x1e0   : > { %921 = vadd.xlane.f32.xlu0 %v920_v36 }
 0x269   : > { %v906_v37 = vpop.xlane.xlu0 %905 }
 0x26a   : > { %v907_v42 = vsub.f32 %v904_v29, %v906_v37 }
 0x26c   : > { %v908_v43 = vmul.f32 1.442695, %v907_v42 }
 0x26e   : > { %1604 = vpow2.f32 %v908_v43 }
 0x278   : > { %v1605_v44 = vpop.eup %1604 }
 0x279   : > { %910 = vadd.xlane.f32.xlu1 %v1605_v44 }
 0x27a   : > { %1649 = shalt.err (!%p1646_p7)
}
 0x27b   : > { %s1650_s5 = scalar_lea.hbm %s2158_s20, 128  ;;  %s1654_s8 = scalar_lea.hbm %s2203_s3, 256 }
 0x27c   : > { %p1651_p8 = scmp.ne.s32.totalorder %s2158_s20, %s1650_s5  ;;  %p1655_p1 = scmp.lt.u32.totalorder %s2158_s20, %s2203_s3 }
 0x27d   : > { %p1656_p0 = scmp.lt.u32.totalorder %s1654_s8, %s1650_s5  ;;  %p1658_p6 = scmp.lt.u32.totalorder %s1650_s5, %s2158_s20 }
 0x27e   : > { %p1652_p11 = pnand %p1651_p8, %p2215_p9 }
 0x27f   : > { %p1657_p5 = por %p1656_p0, %p1655_p1 }
 0x280   : > { %p1653_p13 = pneg %p1652_p11 }
 0x281   : > { %p1659_p10 = por %p1658_p6, %p1657_p5 }
 0x283   : > { %p1660_p12 = pnand %p1659_p10, %p1653_p13 }
 0x285   : > { %1663 = shalt.err (!%p1660_p12)
}
 0x286   : > { %1549 = dma.vmem_to_hbm [thread:$0]  (%p2215_p9), %s952_s12, 128, %s2158_s20, %s934_s22   ;;  %v925_v46 = vshrl.u32 %v237_v9, 7  ;;  %v922_v58 = vpop.xlane.xlu0 %921  ;;  %vm931_vm5 = vcmask 7168  }
 0x287   : > { %s1075_s11 = sshll.u32 %s1759_s19, 3  ;;  %s235_s25 = scalar_lea.vmem %s2204_s4, %s1825_s27 }
 0x288   : > { %v926_v48 = vstv %s1075_s11 }
 0x289   : > { %v927_v53 = vadd.s32 %v926_v48, %v925_v46 }
 0x28b   : > { %vm928_vm4 = vcmp.lt.s32.totalorder %v927_v53, 16 }
 0x306   : > { %v911_v45 = vpop.xlane.xlu1 %910 }
 0x307   : > { %1606 = vlog2.f32 %v911_v45 }
 0x311   : > { %v1607_v52 = vpop.eup %1606 }
 0x312   : > { %v913_v56 = vmul.f32 0.6931472, %v1607_v52 }
 0x314   : > { %v914_v57 = vadd.f32 %v913_v56, %v906_v37 }
 0x316   : > { %v929_v5 = vsub.f32 %v914_v57, %v922_v58 }
 0x318   : > { %v930_v8 = vsel %vm928_vm4, %v929_v5, 0.0 }
 0x319   : > { %932 = vst.msk [vmem:[%s235_s25] sm:$0xff] %vm931_vm5, %v930_v8 }
 0x31a PF: > { %p1561_p9 = scmp.ge.s32.totalorder %s1702_s18, 2  ;;  %s966_s19 = sand.u32 1, %s1690_s15  }
 0x31b   : > { %p2216_p2 = scmp.ne.s32.totalorder %s2209_s26, 0  ;;  %s967_s12 = scalar_lea.sflag [#allocation4], %s966_s19 }
 0x31d   : > { %p1556_p3 = pnand %p1561_p9, %p2216_p2 }
 0x31f   : > { %1685 = dma.done.wait (!%p1556_p3), %s967_s12, 128  }
 0x320   : > { %1687 = vsyncadd (!%p1556_p3), %s967_s12, 4294967168  ;;  %p16_p4 = scmp.ge.s32.totalorder %s1763_s21, 4   ;;  %s2217_s15 = smov %s1694_s16 }
 0x321   : > { %s2218_s16 = smov %s1698_s17  ;;  %s2219_s17 = smov %s1774_s24 }
 0x322   : > { %s2220_s18 = smov %s1763_s21  ;;  %18 = sbr.rel (!%p16_p4) target bundleno = 4 (0x4), region = 87 }
 0x329   :  { %979 = vsyncpa [#allocation3], 1 }
 0x32a   :  { %981 = vsyncpa [#allocation3 + $0x1], 1 }
 0x32b   :  { %982 = vsyncpa [#allocation4], 1 }
 0x32c   :  { %984 = vsyncpa [#allocation4 + $0x1], 1 }

</bundles_post_ra>
